<compile_context>
chip_gen: v6e
topology: v6e:2x2x1
jax: 0.10.0
libtpu: 0.0.40
codegen_flags: <defaults>
</compile_context>

<pallas_src>
import functools
import math

import jax
import jax.numpy as jnp
from jax.experimental import pallas as pl
from jax.experimental.pallas import tpu as pltpu


def _round_up(x: int, m: int) -> int:
    return pl.cdiv(x, m) * m


def _auto_fold(n_atoms: int, d_in: int, d_out: int, max_fold: int = 8) -> int:
    """Smallest row-fold making both folded feature dims lane-dense (x128), if cheap."""
    f_in = 128 // math.gcd(d_in, 128)
    f_out = 128 // math.gcd(d_out, 128)
    lcm = f_in * f_out // math.gcd(f_in, f_out)
    for cand in (lcm, f_in, f_out, 1):
        if 1 <= cand <= max_fold and n_atoms % cand == 0:
            return cand
    return 1


# -----------------------------------------------------------------------------
# Pallas kernel: one atom-tile of the atomwise linear (MXU matmul, f32 accum).
# x is cast to the compute dtype *inside* the kernel (no extra HBM pass).
# -----------------------------------------------------------------------------
def _atomwise_linear_kernel(x_ref, w_ref, o_ref, *, compute_dtype):
    x = x_ref[...].astype(compute_dtype)
    acc = jnp.dot(x, w_ref[...], preferred_element_type=jnp.float32)
    o_ref[...] = acc.astype(o_ref.dtype)


@functools.partial(
    jax.jit,
    static_argnames=("tile_rows", "compute_dtype", "out_dtype", "fold", "vmem_limit_mib"),
)
def atomwise_linear_pallas(
    x,
    w_expanded,
    *,
    tile_rows: int = 8192,
    compute_dtype=jnp.bfloat16,
    out_dtype=None,
    fold=None,
    vmem_limit_mib: int = 48,
):
    """x: [N, D_in] node features, w_expanded: [D_in, D_out]. Returns [N, D_out]."""
    n, d_in = x.shape
    d_in_w, d_out = w_expanded.shape
    assert d_in == d_in_w
    out_dtype = jnp.dtype(x.dtype if out_dtype is None else out_dtype)
    compute_dtype = jnp.dtype(compute_dtype)

    # ---- lane folding: [N, d_in] -> [N/fold, fold*d_in], free (same HBM layout) ----
    if fold is None:
        fold = _auto_fold(n, d_in, d_out)
    assert n % fold == 0, "fold must divide the number of atoms"
    d_in_f, d_out_f = fold * d_in, fold * d_out
    n_rows = n // fold

    xf = x.reshape(n_rows, d_in_f)  # bitcast-style reshape, no copy
    wf = w_expanded if fold == 1 else jnp.kron(
        jnp.eye(fold, dtype=w_expanded.dtype), w_expanded
    )
    wf = wf.astype(compute_dtype)  # tiny, one-time; stays resident in VMEM

    # ---- tile sizing against an explicit VMEM budget ----
    x_bytes = jnp.dtype(x.dtype).itemsize
    o_bytes = out_dtype.itemsize
    w_bytes = compute_dtype.itemsize

    vmem_limit = int(vmem_limit_mib) << 20          # <=48 MiB: safe on v5e/v6e/v7x
    weight_bytes = d_in_f * d_out_f * w_bytes
    row_bytes = 2 * (d_in_f * x_bytes + d_out_f * o_bytes)  # double-buffered in+out
    budget = max(vmem_limit - weight_bytes - (4 << 20), row_bytes * 16)
    max_tile = max(16, (budget // row_bytes) // 16 * 16)

    tr = min(int(tile_rows), max_tile)
    # keep >=2 grid steps when there is enough work (v7x megacore load balance)
    tr = min(tr, max(16, _round_up(pl.cdiv(n_rows, 2), 16)))
    tr = max(16, _round_up(tr, 16))                  # 16 = native bf16 sublane tile
    if tr >= n_rows:
        tr = n_rows                                  # full-extent block: always legal

    grid = (pl.cdiv(n_rows, tr),)                    # ragged final tile handled by Pallas

    cost = pl.CostEstimate(
        flops=2 * n_rows * d_in_f * d_out_f,
        transcendentals=0,
        bytes_accessed=n_rows * d_in_f * x_bytes
        + weight_bytes
        + n_rows * d_out_f * o_bytes,
    )

    kernel = functools.partial(_atomwise_linear_kernel, compute_dtype=compute_dtype)

    out = pl.pallas_call(
        kernel,
        out_shape=jax.ShapeDtypeStruct((n_rows, d_out_f), out_dtype),
        grid=grid,
        in_specs=[
            pl.BlockSpec((tr, d_in_f), lambda i: (i, 0)),
            pl.BlockSpec((d_in_f, d_out_f), lambda i: (0, 0)),  # weight stays resident
        ],
        out_specs=pl.BlockSpec((tr, d_out_f), lambda i: (i, 0)),
        compiler_params=pltpu.CompilerParams(
            dimension_semantics=("parallel",),       # megacore sharding on v7x
            vmem_limit_bytes=vmem_limit,
        ),
        cost_estimate=cost,
    )(xf, wf)

    return out.reshape(n, d_out)                     # free reshape back, no slicing


# -----------------------------------------------------------------------------
# Parameter glue: e3nn-style instructions + expanded weight matrix.
# irreps are (mul, l, parity) triples; e3nn flattens each block as [mul, 2l+1]
# with multiplicity as the outer index.
# -----------------------------------------------------------------------------
def make_instructions(irreps_in, irreps_out):
    pairs = [
        (i_in, i_out)
        for i_out, (_, l_o, p_o) in enumerate(irreps_out)
        for i_in, (_, l_i, p_i) in enumerate(irreps_in)
        if (l_i, p_i) == (l_o, p_o)
    ]
    fan_in = {}
    for i_in, i_out in pairs:
        fan_in[i_out] = fan_in.get(i_out, 0) + irreps_in[i_in][0]
    # e3nn default path_normalization="element": path_weight = fan_in ** -0.5
    return [(i_in, i_out, 1.0 / math.sqrt(fan_in[i_out])) for i_in, i_out in pairs]


def _offsets(irreps):
    dims = [m * (2 * l + 1) for (m, l, _) in irreps]
    off = [0]
    for d in dims:
        off.append(off[-1] + d)
    return off


def build_expanded_weight(weights, irreps_in, irreps_out, instructions, dtype=jnp.float32):
    off_in, off_out = _offsets(irreps_in), _offsets(irreps_out)
    w_full = jnp.zeros((off_in[-1], off_out[-1]), dtype=dtype)
    for w, (i_in, i_out, alpha) in zip(weights, instructions):
        mul_in, l, _ = irreps_in[i_in]
        mul_out = irreps_out[i_out][0]
        dim = 2 * l + 1
        eye = jnp.eye(dim, dtype=dtype)
        # block[i*dim + m, o*dim + m'] = alpha * w[i, o] * delta(m, m')
        block = alpha * jnp.einsum("io,mk->imok", w.astype(dtype), eye)
        block = block.reshape(mul_in * dim, mul_out * dim)
        w_full = w_full.at[
            off_in[i_in] : off_in[i_in] + mul_in * dim,
            off_out[i_out] : off_out[i_out] + mul_out * dim,
        ].add(block)
    return w_full


# Pure-JAX reference of e3nn Linear (per-instruction einsum), for correctness check.
def atomwise_linear_ref(x, weights, irreps_in, irreps_out, instructions):
    n = x.shape[0]
    off_in = _offsets(irreps_in)
    out_blocks = [jnp.zeros((n, m * (2 * l + 1)), jnp.float32) for (m, l, _) in irreps_out]
    for w, (i_in, i_out, alpha) in zip(weights, instructions):
        mul_in, l, _ = irreps_in[i_in]
        mul_out = irreps_out[i_out][0]
        dim = 2 * l + 1
        xb = x[:, off_in[i_in] : off_in[i_in] + mul_in * dim].reshape(n, mul_in, dim)
        ob = alpha * jnp.einsum("nim,io->nom", xb, w, precision=jax.lax.Precision.HIGHEST)
        out_blocks[i_out] = out_blocks[i_out] + ob.reshape(n, mul_out * dim)
    return jnp.concatenate(out_blocks, axis=-1)


if __name__ == "__main__":
    # irreps_in  = "4x0e + 8x1o + 4x0e"  -> d_in  = 4 + 24 + 4 = 32  (repeated 0e block
    #              exercises the multi-path / element-normalization case)
    # irreps_out = "16x0e + 16x1o"       -> d_out = 16 + 48 = 64
    irreps_in = [(4, 0, 1), (8, 1, -1), (4, 0, 1)]   # (mul, l, parity)
    irreps_out = [(16, 0, 1), (16, 1, -1)]
    d_in = sum(m * (2 * l + 1) for (m, l, _) in irreps_in)
    d_out = sum(m * (2 * l + 1) for (m, l, _) in irreps_out)

    instructions = make_instructions(irreps_in, irreps_out)

    key = jax.random.PRNGKey(0)
    keys = jax.random.split(key, len(instructions) + 2)
    weights = [
        jax.random.normal(k, (irreps_in[i_in][0], irreps_out[i_out][0]), dtype=jnp.float32)
        for k, (i_in, i_out, _) in zip(keys[2:], instructions)
    ]
    w_expanded = build_expanded_weight(weights, irreps_in, irreps_out, instructions)

    # ---- Test A: 16 atoms (fold=4 -> 128-lane loads, 256-lane stores), bf16 compute.
    x_a = jax.random.normal(keys[0], (16, d_in), dtype=jnp.float32)
    ref_a = atomwise_linear_ref(x_a, weights, irreps_in, irreps_out, instructions)

    out_bf16 = atomwise_linear_pallas(
        x_a, w_expanded, compute_dtype=jnp.bfloat16, out_dtype=jnp.bfloat16
    )
    out_bf16 = jax.block_until_ready(out_bf16)
    assert out_bf16.shape == ref_a.shape and out_bf16.dtype == jnp.bfloat16
    assert jnp.allclose(out_bf16.astype(jnp.float32), ref_a, atol=1e-1, rtol=1e-1)

    out_bf16_f32 = atomwise_linear_pallas(
        x_a, w_expanded, compute_dtype=jnp.bfloat16, out_dtype=jnp.float32
    )
    out_bf16_f32 = jax.block_until_ready(out_bf16_f32)
    assert jnp.allclose(out_bf16_f32, ref_a, atol=5e-2, rtol=5e-2)

    # ---- Test B: 70 atoms (fold=2, 2-step ragged grid) in f32 — tight check of the
    # expanded-weight semantics and the masked write of the partial final tile.
    x_b = jax.random.normal(keys[1], (70, d_in), dtype=jnp.float32)
    ref_b = atomwise_linear_ref(x_b, weights, irreps_in, irreps_out, instructions)
    out_b = atomwise_linear_pallas(
        x_b, w_expanded, compute_dtype=jnp.float32, out_dtype=jnp.float32, tile_rows=32
    )
    out_b = jax.block_until_ready(out_b)
    assert out_b.shape == ref_b.shape
    assert jnp.allclose(out_b, ref_b, atol=2e-3, rtol=2e-3)

    print("KERNEL_OK")
</pallas_src>

<mosaic_0001>
module attributes {stable_mosaic.version = 11 : i64} {
  func.func @_atomwise_linear_kernel(%arg0: i32, %arg1: memref<4x128xf32, #tpu.memory_space<vmem>>, %arg2: memref<128x256xbf16, #tpu.memory_space<vmem>>, %arg3: memref<4x256xbf16, #tpu.memory_space<vmem>>) attributes {dimension_semantics = [#tpu.dimension_semantics<parallel>], iteration_bounds = array<i64: 1>, scalar_prefetch = 0 : i64, scratch_operands = 0 : i64, tpu.core_type = #tpu.core_type<tc>, window_params = [{transform_indices = @transform_0, window_bounds = array<i64: 4, 128>}, {pipeline_mode = #tpu.pipeline_mode<synchronous>, transform_indices = @transform_1, window_bounds = array<i64: 128, 256>}, {transform_indices = @transform_2, window_bounds = array<i64: 4, 256>}]} {
    %c0 = arith.constant 0 : index
    %c0_0 = arith.constant 0 : index
    %0 = vector.load %arg1[%c0, %c0_0] : memref<4x128xf32, #tpu.memory_space<vmem>>, vector<4x128xf32>
    %1 = arith.truncf %0 : vector<4x128xf32> to vector<4x128xbf16>
    %c0_1 = arith.constant 0 : index
    %c0_2 = arith.constant 0 : index
    %2 = vector.load %arg2[%c0_1, %c0_2] : memref<128x256xbf16, #tpu.memory_space<vmem>>, vector<128x256xbf16>
    %cst = arith.constant dense<0.000000e+00> : vector<4x256xf32>
    %3 = tpu.matmul %1, %2, %cst {dimension_numbers = #tpu.dot_dimension_numbers<[1], [0], [0], [1], [0, 0, 1, 1], [], []>} : vector<4x128xbf16>, vector<128x256xbf16>, vector<4x256xf32> -> vector<4x256xf32>
    %4 = arith.truncf %3 : vector<4x256xf32> to vector<4x256xbf16>
    %c0_3 = arith.constant 0 : index
    %c0_4 = arith.constant 0 : index
    %5 = vector.load %arg3[%c0_3, %c0_4] : memref<4x256xbf16, #tpu.memory_space<vmem>>, vector<4x256xbf16>
    tpu.vector_store %arg3[%c0_3, %c0_4], %4 {strides = array<i32>} : memref<4x256xbf16, #tpu.memory_space<vmem>>, vector<4x256xbf16>,
    return
  }
  func.func @transform_0(%arg0: i32) -> (i32, i32) {
    %c0_i32 = arith.constant 0 : i32
    %c0_i32_0 = arith.constant 0 : i32
    return %arg0, %c0_i32 : i32, i32
  }
  func.func @transform_1(%arg0: i32) -> (i32, i32) {
    %c0_i32 = arith.constant 0 : i32
    %c0_i32_0 = arith.constant 0 : i32
    %c0_i32_1 = arith.constant 0 : i32
    return %c0_i32, %c0_i32_0 : i32, i32
  }
  func.func @transform_2(%arg0: i32) -> (i32, i32) {
    %c0_i32 = arith.constant 0 : i32
    %c0_i32_0 = arith.constant 0 : i32
    return %arg0, %c0_i32 : i32, i32
  }
}

</mosaic_0001>

<bundles_post_ra>
// kernel: atomwise_linear_pallas.1
= control target key start
LH: loop header
LB: loop body
LE: loop exit
PB: predicated region body
PF: predicated region fallthrough
CT: control target
= control target key end

     0   :  { %v212_v1 = vmov 0   ;;  %s282_s1 = inlined_call_operand.vmem [shape: bf16[128,256], index: 1, kind: input, shape index: {}]   ;;  %s283_s0 = inlined_call_operand.vmem [shape: f32[4,128], index: 0, kind: input, shape index: {}]   ;;  %s284_s2 = inlined_call_operand.vmem [shape: bf16[4,256], index: 2, kind: output, shape index: {}]  }
   0x1   :  { %v188_v0 = vld [vmem:[%s282_s1 + $0x74] ss:$8 sps:$4 sm:$0xff]   ;;  %142 = vmatprep.mubr.bf16.mxu0 %v212_v1  ;;  %v190_v2 = vld [vmem:[%s282_s1 + $0x70] ss:$8 sps:$4 sm:$0xff]   ;;  %v191_v3 = vld [vmem:[%s282_s1 + $0x64] ss:$8 sps:$4 sm:$0xff]  }
   0x2   :  { %110 = vmatprep.subr.bf16.mxu0 %v188_v0  ;;  %v193_v4 = vld [vmem:[%s282_s1 + $0x60] ss:$8 sps:$4 sm:$0xff]   ;;  %v194_v5 = vld [vmem:[%s282_s1 + $0x54] ss:$8 sps:$4 sm:$0xff]   ;;  %v196_v6 = vld [vmem:[%s282_s1 + $0x50] ss:$8 sps:$4 sm:$0xff]  }
   0x3   :  { %111 = vmatpush1.bf16.msra.mxu0 %v190_v2  ;;  %v197_v7 = vld [vmem:[%s282_s1 + $0x44] ss:$8 sps:$4 sm:$0xff]   ;;  %v199_v8 = vld [vmem:[%s282_s1 + $0x40] ss:$8 sps:$4 sm:$0xff]   ;;  %v200_v9 = vld [vmem:[%s282_s1 + $0x34] ss:$8 sps:$4 sm:$0xff]  }
   0x4   :  { %112 = vmatprep.subr.bf16.mxu0 %v191_v3  ;;  %v202_v10 = vld [vmem:[%s282_s1 + $0x30] ss:$8 sps:$4 sm:$0xff]   ;;  %v203_v11 = vld [vmem:[%s282_s1 + $0x24] ss:$8 sps:$4 sm:$0xff]   ;;  %v205_v12 = vld [vmem:[%s282_s1 + $0x20] ss:$8 sps:$4 sm:$0xff]  }
   0x5   :  { %v206_v13 = vld [vmem:[%s282_s1 + $0x14] ss:$8 sps:$4 sm:$0xff]   ;;  %v208_v14 = vld [vmem:[%s282_s1 + $0x10] ss:$8 sps:$4 sm:$0xff]   ;;  %v209_v15 = vld [vmem:[%s282_s1 + $0x4] ss:$8 sps:$4 sm:$0xff]  }
   0x6   :  { %v211_v16 = vld [vmem:[%s282_s1] ss:$8 sps:$4 sm:$0xff]  }
   0x7   :  { %113 = vmatpush1.bf16.msra.mxu0 %v193_v4  ;;  %v12_v17 = vld [vmem:[%s283_s0] sm:$0xf] }
   0x8   :  { %114 = vmatprep.subr.bf16.mxu0 %v194_v5  ;;  %v13_v18 = vpack.c.bf16 %v12_v17, %v12_v17 }
   0xb   :  { %115 = vmatpush1.bf16.msra.mxu0 %v196_v6 }
   0xc   :  { %116 = vmatprep.subr.bf16.mxu0 %v197_v7 }
   0xf   :  { %117 = vmatpush1.bf16.msra.mxu0 %v199_v8 }
  0x10   :  { %118 = vmatprep.subr.bf16.mxu0 %v200_v9 }
  0x13   :  { %119 = vmatpush1.bf16.msra.mxu0 %v202_v10 }
  0x14   :  { %120 = vmatprep.subr.bf16.mxu0 %v203_v11 }
  0x17   :  { %121 = vmatpush1.bf16.msra.mxu0 %v205_v12 }
  0x18   :  { %122 = vmatprep.subr.bf16.mxu0 %v206_v13 }
  0x1b   :  { %123 = vmatpush1.bf16.msra.mxu0 %v208_v14 }
  0x1c   :  { %124 = vmatprep.subr.bf16.mxu0 %v209_v15 }
  0x1f   :  { %125 = vmatpush1.bf16.msra.mxu0 %v211_v16 }
  0x22   :  { %143 = vmatmul.mubr.bf16.vlgmr.msra.gmra.mxu0 %v13_v18 }
  0xe2   :  { %v144_v19 = vpop.f32.mrf.mxu0 }
  0xe4   :  { %v146_v20 = vpop.f32.mrf.mxu0 }
  0xe5   :  { %v185_v21 = vpack.c.bf16 %v146_v20, %v144_v19 }
  0xe6   :  { %v148_v22 = vpop.f32.mrf.mxu0 }
  0xe7   :  { %186 = vst.sshfl [vmem:[%s284_s2] sm:$0x33 pattern:$0x76325410] %v185_v21 }
  0xe8   :  { %v149_v23 = vpop.f32.mrf.mxu0 }

</bundles_post_ra>
